<compile_context>
chip_gen: v6e
topology: v6e:2x2x1
jax: 0.10.0
libtpu: 0.0.40
codegen_flags: <defaults>
</compile_context>

<pallas_src>
import jax
import jax.numpy as jnp
from jax.experimental import pallas as pl
from jax.experimental.pallas import tpu as pltpu

HIDDEN = 128            # the module hard-codes nn.Linear(input_dim, 128)
SUB = 16                # batch alignment (covers bf16 sublane packing)
MAX_BLOCK_B = 8192      # review: 2048-8192 tiles amortize per-step overhead
VMEM_BUDGET = 20 << 20  # conservative double-buffer budget (fits 32 MiB scoped)


def _round_up(n, m):
    return ((n + m - 1) // m) * m


def mlp_kernel(x_ref, w1_ref, b1_ref, w2_ref, b2_ref, o_ref):
    # First linear: bf16 operands on the MXU, f32 accumulation.
    x = x_ref[...]
    if x.dtype != jnp.bfloat16:            # accept bf16 activations directly
        x = x.astype(jnp.bfloat16)
    h = jnp.dot(x, w1_ref[...], preferred_element_type=jnp.float32)
    # Bias add + ReLU epilogue in f32 on the VPU (b1 is a lane-dense (1,128) row).
    h = jnp.maximum(h + b1_ref[...], 0.0)
    # TODO(synk): training-mode nn.Dropout(0.2) would need pltpu.prng_seed +
    # pltpu.prng_random_bits for an in-vreg mask; inference forward is identity.
    # Second linear: narrow-N matmul (N = num_classes), f32 accumulate.
    out = jnp.dot(h.astype(jnp.bfloat16), w2_ref[...],
                  preferred_element_type=jnp.float32)
    # Narrow masked store: bf16 + un-padded num_classes minimizes the HBM
    # writeback stream (the previously dominant byte stream).
    o_ref[...] = (out + b2_ref[...]).astype(o_ref.dtype)


def mlp_forward(x, w1, b1, w2, b2, *, block_b=None):
    """x: (B, input_dim) float32 or bfloat16.
    w1: (input_dim, 128), b1: (128,), w2: (128, C), b2: (C,).
    (PyTorch stores Linear weight as (out,in); these are pre-transposed.)
    Returns (B, C) float32 logits."""
    B, D = x.shape
    H = w1.shape[1]
    C = w2.shape[1]

    # bf16 weights for the MXU (halves resident VMEM + DMA); f32 biases for the
    # exact epilogue.
    w1b = w1.astype(jnp.bfloat16)
    w2b = w2.astype(jnp.bfloat16)
    b1r = b1.astype(jnp.float32).reshape(1, H)
    b2r = b2.astype(jnp.float32).reshape(1, C)

    x_bytes = jnp.dtype(x.dtype).itemsize
    out_bytes = 2  # bf16 kernel output

    b_aligned = _round_up(B, SUB)
    if block_b is None:
        # Per-row VMEM: double-buffered x / out tiles + f32/bf16 intermediates.
        per_row = 2 * D * x_bytes + 2 * C * out_bytes + H * 4 + H * 2 + D * 2
        tb = min(MAX_BLOCK_B, (VMEM_BUDGET // per_row) // SUB * SUB)
        # Keep >=2 balanced grid steps so v7x megacore can shard the batch loop.
        if b_aligned >= 2 * SUB:
            tb = min(tb, _round_up((b_aligned + 1) // 2, SUB))
        tb = max(tb, SUB)
    else:
        tb = max(SUB, _round_up(block_b, SUB))
    tb = min(tb, b_aligned)

    b_padded = _round_up(b_aligned, tb)
    if b_padded != B:
        x = jnp.pad(x, ((0, b_padded - B), (0, 0)))

    grid = (b_padded // tb,)

    flops = 2 * b_padded * (D * H + H * C)
    bytes_accessed = (b_padded * D * x_bytes          # x stream
                      + w1b.size * 2 + w2b.size * 2   # resident weights
                      + b1r.size * 4 + b2r.size * 4   # resident biases
                      + b_padded * C * out_bytes)     # bf16 output stream

    out = pl.pallas_call(
        mlp_kernel,
        out_shape=jax.ShapeDtypeStruct((b_padded, C), jnp.bfloat16),
        grid_spec=pltpu.PrefetchScalarGridSpec(
            num_scalar_prefetch=0,
            grid=grid,
            in_specs=[
                pl.BlockSpec((tb, D), lambda i: (i, 0)),   # x tile (streamed)
                pl.BlockSpec((D, H), lambda i: (0, 0)),    # w1 (VMEM-resident)
                pl.BlockSpec((1, H), lambda i: (0, 0)),    # b1 (resident)
                pl.BlockSpec((H, C), lambda i: (0, 0)),    # w2 (resident)
                pl.BlockSpec((1, C), lambda i: (0, 0)),    # b2 (resident)
            ],
            out_specs=pl.BlockSpec((tb, C), lambda i: (i, 0)),
        ),
        compiler_params=pltpu.CompilerParams(
            dimension_semantics=("parallel",),   # v7x: shard batch over 2 TCs
            vmem_limit_bytes=32 << 20,           # headroom for the large tiles
        ),
        cost_estimate=pl.CostEstimate(
            flops=flops, bytes_accessed=bytes_accessed, transcendentals=0),
    )(x, w1b, b1r, w2b, b2r)

    # Strip batch padding; upcast once (tiny, C-wide) for f32-logit callers.
    return out[:B].astype(jnp.float32)


def init_params(key, input_dim, num_classes, hidden=HIDDEN):
    """Deterministic synthetic init matching PyTorch Linear shapes.
    PyTorch stores weight as (out, in); we keep the (in, out) transpose."""
    k1, k2, k3, k4 = jax.random.split(key, 4)
    bound1 = 1.0 / jnp.sqrt(input_dim)
    bound2 = 1.0 / jnp.sqrt(hidden)
    w1 = jax.random.uniform(k1, (input_dim, hidden), jnp.float32, -bound1, bound1)
    b1 = jax.random.uniform(k2, (hidden,), jnp.float32, -bound1, bound1)
    w2 = jax.random.uniform(k3, (hidden, num_classes), jnp.float32, -bound2, bound2)
    b2 = jax.random.uniform(k4, (num_classes,), jnp.float32, -bound2, bound2)
    return w1, b1, w2, b2


if __name__ == "__main__":
    key = jax.random.PRNGKey(0)
    kx, kp = jax.random.split(key)

    batch = 30         # not a multiple of 16 -> exercises ragged-tile padding
    input_dim = 16     # tabular feature count
    num_classes = 8    # fertilizer classes (un-padded narrow output)

    x = jax.random.normal(kx, (batch, input_dim), jnp.float32)
    w1, b1, w2, b2 = init_params(kp, input_dim, num_classes)

    # Default tile derivation -> tb=16, 2-step grid on this tiny example.
    out = mlp_forward(x, w1, b1, w2, b2)
    out = jax.block_until_ready(out)

    # Reference in plain JAX with the same bf16-operand / f32-accumulate math,
    # downcast through bf16 once to match the kernel's output dtype.
    xb = x.astype(jnp.bfloat16)
    h_ref = jnp.dot(xb, w1.astype(jnp.bfloat16), preferred_element_type=jnp.float32)
    h_ref = jnp.maximum(h_ref + b1, 0.0)
    ref = jnp.dot(h_ref.astype(jnp.bfloat16), w2.astype(jnp.bfloat16),
                  preferred_element_type=jnp.float32) + b2
    ref = ref.astype(jnp.bfloat16).astype(jnp.float32)

    assert out.shape == (batch, num_classes)
    assert out.dtype == jnp.float32
    assert jnp.allclose(out, ref, atol=2e-2, rtol=2e-2)

    print("KERNEL_OK")
</pallas_src>

<mosaic_0001>
module attributes {stable_mosaic.version = 11 : i64} {
  func.func @mlp_kernel(%arg0: i32, %arg1: memref<16x16xf32, #tpu.memory_space<vmem>>, %arg2: memref<16x128xbf16, #tpu.memory_space<vmem>>, %arg3: memref<1x128xf32, #tpu.memory_space<vmem>>, %arg4: memref<128x8xbf16, #tpu.memory_space<vmem>>, %arg5: memref<1x8xf32, #tpu.memory_space<vmem>>, %arg6: memref<16x8xbf16, #tpu.memory_space<vmem>>) attributes {dimension_semantics = [#tpu.dimension_semantics<parallel>], iteration_bounds = array<i64: 2>, scalar_prefetch = 0 : i64, scratch_operands = 0 : i64, tpu.core_type = #tpu.core_type<tc>, window_params = [{transform_indices = @transform_0, window_bounds = array<i64: 16, 16>}, {pipeline_mode = #tpu.pipeline_mode<synchronous>, transform_indices = @transform_1, window_bounds = array<i64: 16, 128>}, {pipeline_mode = #tpu.pipeline_mode<synchronous>, transform_indices = @transform_2, window_bounds = array<i64: 1, 128>}, {pipeline_mode = #tpu.pipeline_mode<synchronous>, transform_indices = @transform_3, window_bounds = array<i64: 128, 8>}, {pipeline_mode = #tpu.pipeline_mode<synchronous>, transform_indices = @transform_4, window_bounds = array<i64: 1, 8>}, {transform_indices = @transform_5, window_bounds = array<i64: 16, 8>}]} {
    %c0 = arith.constant 0 : index
    %c0_0 = arith.constant 0 : index
    %0 = vector.load %arg1[%c0, %c0_0] : memref<16x16xf32, #tpu.memory_space<vmem>>, vector<16x16xf32>
    %1 = arith.truncf %0 : vector<16x16xf32> to vector<16x16xbf16>
    %c0_1 = arith.constant 0 : index
    %c0_2 = arith.constant 0 : index
    %2 = vector.load %arg2[%c0_1, %c0_2] : memref<16x128xbf16, #tpu.memory_space<vmem>>, vector<16x128xbf16>
    %cst = arith.constant dense<0.000000e+00> : vector<16x128xf32>
    %3 = tpu.matmul %1, %2, %cst {dimension_numbers = #tpu.dot_dimension_numbers<[1], [0], [0], [1], [0, 0, 1, 1], [], []>} : vector<16x16xbf16>, vector<16x128xbf16>, vector<16x128xf32> -> vector<16x128xf32>
    %c0_3 = arith.constant 0 : index
    %c0_4 = arith.constant 0 : index
    %4 = vector.load %arg3[%c0_3, %c0_4] : memref<1x128xf32, #tpu.memory_space<vmem>>, vector<1x128xf32>
    %5 = vector.broadcast %4 : vector<1x128xf32> to vector<16x128xf32>
    %6 = arith.addf %3, %5 : vector<16x128xf32>
    %cst_5 = arith.constant 0.000000e+00 : f32
    %7 = vector.broadcast %cst_5 : f32 to vector<16x128xf32>
    %8 = arith.maximumf %6, %7 : vector<16x128xf32>
    %9 = arith.truncf %8 : vector<16x128xf32> to vector<16x128xbf16>
    %c0_6 = arith.constant 0 : index
    %c0_7 = arith.constant 0 : index
    %10 = vector.load %arg4[%c0_6, %c0_7] : memref<128x8xbf16, #tpu.memory_space<vmem>>, vector<128x8xbf16>
    %cst_8 = arith.constant dense<0.000000e+00> : vector<16x8xf32>
    %11 = tpu.matmul %9, %10, %cst_8 {dimension_numbers = #tpu.dot_dimension_numbers<[1], [0], [0], [1], [0, 0, 1, 1], [], []>} : vector<16x128xbf16>, vector<128x8xbf16>, vector<16x8xf32> -> vector<16x8xf32>
    %c0_9 = arith.constant 0 : index
    %c0_10 = arith.constant 0 : index
    %12 = vector.load %arg5[%c0_9, %c0_10] : memref<1x8xf32, #tpu.memory_space<vmem>>, vector<1x8xf32>
    %13 = vector.broadcast %12 : vector<1x8xf32> to vector<16x8xf32>
    %14 = arith.addf %11, %13 : vector<16x8xf32>
    %15 = arith.truncf %14 : vector<16x8xf32> to vector<16x8xbf16>
    %c0_11 = arith.constant 0 : index
    %c0_12 = arith.constant 0 : index
    %16 = vector.load %arg6[%c0_11, %c0_12] : memref<16x8xbf16, #tpu.memory_space<vmem>>, vector<16x8xbf16>
    tpu.vector_store %arg6[%c0_11, %c0_12], %15 {strides = array<i32>} : memref<16x8xbf16, #tpu.memory_space<vmem>>, vector<16x8xbf16>,
    return
  }
  func.func @transform_0(%arg0: i32) -> (i32, i32) {
    %c0_i32 = arith.constant 0 : i32
    %c0_i32_0 = arith.constant 0 : i32
    return %arg0, %c0_i32 : i32, i32
  }
  func.func @transform_1(%arg0: i32) -> (i32, i32) {
    %c0_i32 = arith.constant 0 : i32
    %c0_i32_0 = arith.constant 0 : i32
    %c0_i32_1 = arith.constant 0 : i32
    return %c0_i32, %c0_i32_0 : i32, i32
  }
  func.func @transform_2(%arg0: i32) -> (i32, i32) {
    %c0_i32 = arith.constant 0 : i32
    %c0_i32_0 = arith.constant 0 : i32
    %c0_i32_1 = arith.constant 0 : i32
    return %c0_i32, %c0_i32_0 : i32, i32
  }
  func.func @transform_3(%arg0: i32) -> (i32, i32) {
    %c0_i32 = arith.constant 0 : i32
    %c0_i32_0 = arith.constant 0 : i32
    %c0_i32_1 = arith.constant 0 : i32
    return %c0_i32, %c0_i32_0 : i32, i32
  }
  func.func @transform_4(%arg0: i32) -> (i32, i32) {
    %c0_i32 = arith.constant 0 : i32
    %c0_i32_0 = arith.constant 0 : i32
    %c0_i32_1 = arith.constant 0 : i32
    return %c0_i32, %c0_i32_0 : i32, i32
  }
  func.func @transform_5(%arg0: i32) -> (i32, i32) {
    %c0_i32 = arith.constant 0 : i32
    %c0_i32_0 = arith.constant 0 : i32
    return %arg0, %c0_i32 : i32, i32
  }
}

</mosaic_0001>

<bundles_post_ra>
// kernel: tpu_custom_call.1
= control target key start
LH: loop header
LB: loop body
LE: loop exit
PB: predicated region body
PF: predicated region fallthrough
CT: control target
= control target key end

     0   :  { %s597_s18 = smov 0   ;;  %s651_s0 = inlined_call_operand.vmem [shape: f32[32,16], index: 0, kind: input, shape index: {}]   ;;  %s652_s1 = inlined_call_operand.vmem [shape: bf16[16,128], index: 1, kind: input, shape index: {}]   ;;  %s653_s2 = inlined_call_operand.vmem [shape: f32[1,128], index: 2, kind: input, shape index: {}]   ;;  %s654_s3 = inlined_call_operand.vmem [shape: bf16[128,8], index: 3, kind: input, shape index: {}]   ;;  %s655_s4 = inlined_call_operand.vmem [shape: f32[1,8], index: 4, kind: input, shape index: {}]   ;;  %s656_s5 = inlined_call_operand.vmem [shape: bf16[32,8], index: 5, kind: output, shape index: {}]  }
   0x1 LB: > { %s474_s19 = sadd.s32 4294967295, %s563_s18   ;;  %p478_p0 = scmp.ge.s32.totalorder %s563_s18, 1  ;;  %s563_s18 = sphi %s597_s18, %s15_s18  }
   0x2   : > { %p188_p1 = scmp.lt.s32.totalorder %s563_s18, 3 }
   0x4   : > { %p189_p2 = pnand %p478_p0, %p188_p1 }
   0x5   : > { %s479_s22 = sshll.u32 (!%p189_p2), %s474_s19, 1 }
   0x6   : > { %192 = sbr.rel (%p189_p2) target bundleno = 422 (0x1a6), region = 40  ;;  %p217_p3 = scmp.lt.s32.totalorder (!%p189_p2), %s479_s22, 3 }
   0xb   : > { %v548_v0 = vld [vmem:[%s652_s1] sm:$0xff]   ;;  %v565_v1 = vmov 0.0   ;;  %v549_v2 = vld [vmem:[%s654_s3 + $0x38] sm:$0xff]   ;;  %vm566_vm0 = vmmov 0   ;;  %v550_v3 = vld [vmem:[%s654_s3 + $0x30] sm:$0xff]   ;;  %s658_s22 = smov (!%p217_p3, %s479_s22), 3 }
   0xc   : > { %512 = vmatprep.subr.bf16.mxu0 %v565_v1  ;;  %518 = vmatprep.subr.bf16.mxu1 %v565_v1  ;;  %s480_s27 = sshll.u32 %s658_s22, 3  ;;  %v551_v4 = vld [vmem:[%s654_s3 + $0x28] sm:$0xff]   ;;  %vm247_vm1 = vcmask 130048   ;;  %v552_v8 = vld [vmem:[%s654_s3 + $0x20] sm:$0xff]   ;;  %v553_v9 = vld [vmem:[%s654_s3 + $0x18] sm:$0xff]   ;;  %s482_s24 = sshll.u32 %s658_s22, 2 }
   0xd   : > { %513 = vmatpush3.bf16.msra.mxu0 %v548_v0  ;;  %514 = vmatprep.mubr.msk.bf16.mxu0 %vm566_vm0, %v565_v1  ;;  %s220_s7 = scalar_lea.vmem %s651_s0, %s480_s27  ;;  %v554_v10 = vld [vmem:[%s654_s3 + $0x10] sm:$0xff]   ;;  %v555_v11 = vld [vmem:[%s654_s3 + $0x8] sm:$0xff]   ;;  %v556_v12 = vld [vmem:[%s654_s3] sm:$0xff]   ;;  %s226_s27 = scalar_lea.vmem %s656_s5, %s482_s24  ;;  %vm415_vm2 = vcmask 60416  }
   0xe   : > { %519 = vmatpush3.bf16.msra.mxu1 %v549_v2  ;;  %534 = vmatprep.mubr.msk.bf16.mxu1 %vm566_vm0, %v565_v1  ;;  %v229_v5 = vld [vmem:[%s220_s7] sm:$0xff]  ;;  %v230_v6 = vld [vmem:[%s220_s7 + $0x8] sm:$0xff] }
   0xf   : > { %520 = vmatprep.subr.bf16.mxu1 %v565_v1  ;;  %v231_v7 = vpack.c.bf16 %v230_v6, %v229_v5  ;;  %v483_v13 = vld [vmem:[%s653_s2] ss:$0 sm:$0xff] }
  0x10   : > { %v486_v23 = vld [vmem:[%s655_s4] ss:$0 sm:$0xff] }
  0x11   : > { %515 = vmatmul.mubr.msk.bf16.vlgmr.msra.gmra.mxu0 %vm247_vm1, %v231_v7 }
  0x12   : > { %521 = vmatpush3.bf16.msra.mxu1 %v550_v3 }
  0x13   : > { %522 = vmatprep.subr.bf16.mxu1 %v565_v1 }
  0x16   : > { %523 = vmatpush3.bf16.msra.mxu1 %v551_v4 }
  0x17   : > { %524 = vmatprep.subr.bf16.mxu1 %v565_v1 }
  0x1a   : > { %525 = vmatpush3.bf16.msra.mxu1 %v552_v8 }
  0x1b   : > { %526 = vmatprep.subr.bf16.mxu1 %v565_v1 }
  0x1e   : > { %527 = vmatpush3.bf16.msra.mxu1 %v553_v9 }
  0x1f   : > { %528 = vmatprep.subr.bf16.mxu1 %v565_v1 }
  0x22   : > { %529 = vmatpush3.bf16.msra.mxu1 %v554_v10 }
  0x23   : > { %530 = vmatprep.subr.bf16.mxu1 %v565_v1 }
  0x26   : > { %531 = vmatpush3.bf16.msra.mxu1 %v555_v11 }
  0x27   : > { %532 = vmatprep.subr.bf16.mxu1 %v565_v1 }
  0x2a   : > { %533 = vmatpush3.bf16.msra.mxu1 %v556_v12 }
  0xd1   : > { %v285_v14 = vpop.f32.mrf.mxu0 }
  0xd2   : > { %v286_v16 = vadd.f32 %v483_v13, %v285_v14 }
  0xd3   : > { %v516_v15 = vpop.f32.mrf.mxu0 }
  0xd4   : > { %v292_v20 = vmax.f32 %v286_v16, 0.0 }
  0xd5   : > { %v288_v17 = vpop.f32.mrf.mxu0 }
  0xd6   : > { %v289_v18 = vadd.f32 %v483_v13, %v288_v17 }
  0xd7   : > { %v517_v19 = vpop.f32.mrf.mxu0 }
  0xd8   : > { %v293_v21 = vmax.f32 %v289_v18, 0.0 }
  0xda   : > { %v294_v22 = vpack.c.bf16 %v293_v21, %v292_v20 }
  0xdc   : > { %535 = vmatmul.mubr.bf16.vlgmr.msra.gmra.mxu1 %v294_v22 }
 0x19c   : > { %v400_v24 = vpop.f32.mrf.mxu1 }
 0x19d   : > { %v401_v25 = vadd.f32 %v486_v23, %v400_v24 }
 0x19e   : > { %v536_v26 = vpop.f32.mrf.mxu1 }
 0x19f   : > { %v499_v27 = vpack.c.bf16 %v401_v25, %v401_v25 }
 0x1a0   : > { %v403_v28 = vpop.f32.mrf.mxu1 }
 0x1a1   : > { %416 = vst.msk [vmem:[%s226_s27] sm:$0xf] %vm415_vm2, %v499_v27  ;;  %v404_v29 = vadd.f32 %v486_v23, %v403_v28 }
 0x1a2   : > { %v537_v30 = vpop.f32.mrf.mxu1 }
 0x1a3   : > { %v500_v31 = vpack.c.bf16 %v404_v29, %v404_v29 }
 0x1a5   : > { %417 = vst.msk [vmem:[%s226_s27 + $0x4] sm:$0xf] %vm415_vm2, %v500_v31 }
 0x1a6 PF: > { %s15_s18 = sadd.s32 1, %s563_s18  }
 0x1a7   : > { %p12_p4 = scmp.ge.s32.totalorder %s15_s18, 4  }
 0x1a9   :  { %14 = sbr.rel (!%p12_p4) target bundleno = 1 (0x1), region = 70 }

</bundles_post_ra>
